<compile_context>
chip_gen: v7x
topology: tpu7x:2x2x1
jax: 0.10.0
libtpu: 0.0.40
codegen_flags: <defaults>
</compile_context>

<pallas_src>
import functools

import jax
import jax.numpy as jnp
from jax.experimental import pallas as pl
from jax.experimental.pallas import tpu as pltpu


def _round_up(a: int, b: int) -> int:
    return ((a + b - 1) // b) * b


def simple_nn_kernel(x_ref, w1_ref, w2_ref, b_ref, o_ref, *, hid: int):
    # x_ref:  (TM, in)            bf16
    # w1_ref: (in, hid)           bf16
    # w2_ref: (hid, out_pad)      bf16 (zero-padded columns)
    # b_ref:  (1, hid + out_pad)  f32  (b1 | b2_padded concatenated)
    # o_ref:  (TM, out_pad)       f32  (lane-dense, padded to 128)
    b1 = b_ref[:, :hid]          # (1, hid)      -> broadcast over batch
    b2 = b_ref[:, hid:]          # (1, out_pad)

    # Hidden layer: bf16 MXU matmul, f32 accumulate, f32 elementwise.
    h = jnp.dot(x_ref[...], w1_ref[...], preferred_element_type=jnp.float32)
    h = jnp.maximum(h + b1, 0.0)

    # Output layer: cast activation to bf16 only for the MXU; elementwise stays f32.
    y = jnp.dot(h.astype(jnp.bfloat16), w2_ref[...],
                preferred_element_type=jnp.float32)
    o_ref[...] = jax.nn.sigmoid(y + b2) * 4.0 + 1.0


def simple_nn_forward(x, w1, b1, w2, b2, *, tm: int = 512):
    """x: [B, in] f32, w1: [in, hid], b1: [1, hid], w2: [hid, out], b2: [1, out]."""
    B, in_dim = x.shape
    hid = w1.shape[1]
    out_dim = w2.shape[1]

    # Lane-dense output: pad N of layer2 up to a multiple of 128.
    out_pad = _round_up(max(out_dim, 128), 128)

    # Batch tile: big tiles amortize per-step overhead; clamp for small demo batches.
    tm = min(tm, _round_up(B, 8))
    b_total = _round_up(B, tm)

    # Pad batch rows with zeros so the grid divides evenly (sliced off below).
    x_p = x if b_total == B else jnp.pad(x, ((0, b_total - B), (0, 0)))
    w2_p = jnp.pad(w2, ((0, 0), (0, out_pad - out_dim)))
    b2_p = jnp.pad(b2, ((0, 0), (0, out_pad - out_dim)))

    # bf16 matmul operands (halves DMA bytes, 2x MXU rate); biases stay f32.
    x_bf = x_p.astype(jnp.bfloat16)
    w1_bf = w1.astype(jnp.bfloat16)
    w2_bf = w2_p.astype(jnp.bfloat16)
    b_cat = jnp.concatenate([b1, b2_p], axis=1).astype(jnp.float32)  # one bias DMA

    grid = (b_total // tm,)
    out = pl.pallas_call(
        functools.partial(simple_nn_kernel, hid=hid),
        out_shape=jax.ShapeDtypeStruct((b_total, out_pad), jnp.float32),
        grid=grid,
        in_specs=[
            # x is tiled over batch; weights/biases are full-array, VMEM-resident.
            pl.BlockSpec((tm, in_dim), lambda i: (i, 0)),
            pl.BlockSpec((in_dim, hid), lambda i: (0, 0)),
            pl.BlockSpec((hid, out_pad), lambda i: (0, 0)),
            pl.BlockSpec((1, hid + out_pad), lambda i: (0, 0)),
        ],
        out_specs=pl.BlockSpec((tm, out_pad), lambda i: (i, 0)),
        compiler_params=pltpu.CompilerParams(
            # Batch tiles are independent -> shard across the 2 TCs on v7x.
            dimension_semantics=("parallel",)),
    )(x_bf, w1_bf, w2_bf, b_cat)

    return out[:B, :out_dim]


def init_params(key, input_size, hidden_size, output_size):
    """Deterministic init mimicking PyTorch nn.Linear default (uniform +/- 1/sqrt(fan_in)).
    Weights stored already transposed to [in, out] so the kernel is a straight x @ W."""
    k1, k2, k3, k4 = jax.random.split(key, 4)
    bound1 = 1.0 / jnp.sqrt(input_size)
    bound2 = 1.0 / jnp.sqrt(hidden_size)
    w1 = jax.random.uniform(k1, (input_size, hidden_size), jnp.float32, -bound1, bound1)
    b1 = jax.random.uniform(k2, (1, hidden_size), jnp.float32, -bound1, bound1)
    w2 = jax.random.uniform(k3, (hidden_size, output_size), jnp.float32, -bound2, bound2)
    b2 = jax.random.uniform(k4, (1, output_size), jnp.float32, -bound2, bound2)
    return w1, b1, w2, b2


def reference_forward_f32(x, w1, b1, w2, b2):
    h = jnp.maximum(x @ w1 + b1, 0.0)
    return jax.nn.sigmoid(h @ w2 + b2) * 4.0 + 1.0


def reference_forward_bf16(x, w1, b1, w2, b2):
    """Same bf16-operand / f32-accumulate recipe as the kernel, in plain JAX."""
    h = jnp.dot(x.astype(jnp.bfloat16), w1.astype(jnp.bfloat16),
                preferred_element_type=jnp.float32) + b1
    h = jnp.maximum(h, 0.0)
    y = jnp.dot(h.astype(jnp.bfloat16), w2.astype(jnp.bfloat16),
                preferred_element_type=jnp.float32) + b2
    return jax.nn.sigmoid(y) * 4.0 + 1.0


if __name__ == "__main__":
    key = jax.random.PRNGKey(0)
    kx, kp = jax.random.split(key)

    # Small shapes consistent with the module: input_size=16, hidden=32, output=8.
    # batch=256 with tm=128 exercises a 2-step batch grid.
    batch, input_size, hidden_size, output_size = 256, 16, 32, 8

    x = jax.random.normal(kx, (batch, input_size), dtype=jnp.float32)
    w1, b1, w2, b2 = init_params(kp, input_size, hidden_size, output_size)

    fwd = jax.jit(functools.partial(simple_nn_forward, tm=128))
    out = jax.block_until_ready(fwd(x, w1, b1, w2, b2))

    assert out.shape == (batch, output_size)

    # Tight check against a reference using the exact bf16-operand recipe of the kernel.
    ref_bf16 = reference_forward_bf16(x, w1, b1, w2, b2)
    assert jnp.allclose(out, ref_bf16, atol=1e-3, rtol=1e-3)

    # Loose check against the full-f32 PyTorch-equivalent forward (bf16 operand rounding).
    ref_f32 = reference_forward_f32(x, w1, b1, w2, b2)
    assert jnp.allclose(out, ref_f32, atol=5e-2, rtol=5e-2)
    # Output range sanity (sigmoid*4+1 must lie in (1, 5)).
    assert bool(jnp.all(out > 1.0)) and bool(jnp.all(out < 5.0))

    print("KERNEL_OK")
</pallas_src>

<mosaic_0001>
module attributes {stable_mosaic.version = 11 : i64} {
  func.func @simple_nn_kernel(%arg0: i32, %arg1: memref<128x16xbf16, #tpu.memory_space<vmem>>, %arg2: memref<16x32xbf16, #tpu.memory_space<vmem>>, %arg3: memref<32x128xbf16, #tpu.memory_space<vmem>>, %arg4: memref<1x160xf32, #tpu.memory_space<vmem>>, %arg5: memref<128x128xf32, #tpu.memory_space<vmem>>) attributes {dimension_semantics = [#tpu.dimension_semantics<parallel>], iteration_bounds = array<i64: 2>, scalar_prefetch = 0 : i64, scratch_operands = 0 : i64, tpu.core_type = #tpu.core_type<tc>, window_params = [{transform_indices = @transform_0, window_bounds = array<i64: 128, 16>}, {pipeline_mode = #tpu.pipeline_mode<synchronous>, transform_indices = @transform_1, window_bounds = array<i64: 16, 32>}, {pipeline_mode = #tpu.pipeline_mode<synchronous>, transform_indices = @transform_2, window_bounds = array<i64: 32, 128>}, {pipeline_mode = #tpu.pipeline_mode<synchronous>, transform_indices = @transform_3, window_bounds = array<i64: 1, 160>}, {transform_indices = @transform_4, window_bounds = array<i64: 128, 128>}]} {
    %c0 = arith.constant 0 : index
    %c0_0 = arith.constant 0 : index
    %0 = vector.load %arg4[%c0, %c0_0] : memref<1x160xf32, #tpu.memory_space<vmem>>, vector<1x32xf32>
    %c0_1 = arith.constant 0 : index
    %c32 = arith.constant 32 : index
    %1 = vector.load %arg4[%c0_1, %c32] : memref<1x160xf32, #tpu.memory_space<vmem>>, vector<1x128xf32>
    %c0_2 = arith.constant 0 : index
    %c0_3 = arith.constant 0 : index
    %2 = vector.load %arg1[%c0_2, %c0_3] : memref<128x16xbf16, #tpu.memory_space<vmem>>, vector<128x16xbf16>
    %c0_4 = arith.constant 0 : index
    %c0_5 = arith.constant 0 : index
    %3 = vector.load %arg2[%c0_4, %c0_5] : memref<16x32xbf16, #tpu.memory_space<vmem>>, vector<16x32xbf16>
    %cst = arith.constant dense<0.000000e+00> : vector<128x32xf32>
    %4 = tpu.matmul %2, %3, %cst {dimension_numbers = #tpu.dot_dimension_numbers<[1], [0], [0], [1], [0, 0, 1, 1], [], []>} : vector<128x16xbf16>, vector<16x32xbf16>, vector<128x32xf32> -> vector<128x32xf32>
    %5 = vector.broadcast %0 : vector<1x32xf32> to vector<128x32xf32>
    %6 = arith.addf %4, %5 : vector<128x32xf32>
    %cst_6 = arith.constant 0.000000e+00 : f32
    %7 = vector.broadcast %cst_6 : f32 to vector<128x32xf32>
    %8 = arith.maximumf %6, %7 : vector<128x32xf32>
    %9 = arith.truncf %8 : vector<128x32xf32> to vector<128x32xbf16>
    %c0_7 = arith.constant 0 : index
    %c0_8 = arith.constant 0 : index
    %10 = vector.load %arg3[%c0_7, %c0_8] : memref<32x128xbf16, #tpu.memory_space<vmem>>, vector<32x128xbf16>
    %cst_9 = arith.constant dense<0.000000e+00> : vector<128x128xf32>
    %11 = tpu.matmul %9, %10, %cst_9 {dimension_numbers = #tpu.dot_dimension_numbers<[1], [0], [0], [1], [0, 0, 1, 1], [], []>} : vector<128x32xbf16>, vector<32x128xbf16>, vector<128x128xf32> -> vector<128x128xf32>
    %12 = vector.broadcast %1 : vector<1x128xf32> to vector<128x128xf32>
    %13 = arith.addf %11, %12 : vector<128x128xf32>
    %14 = arith.negf %13 : vector<128x128xf32>
    %15 = math.exp %14 : vector<128x128xf32>
    %cst_10 = arith.constant 1.000000e+00 : f32
    %16 = vector.broadcast %cst_10 : f32 to vector<128x128xf32>
    %17 = arith.addf %16, %15 : vector<128x128xf32>
    %18 = arith.divf %16, %17 : vector<128x128xf32>
    %cst_11 = arith.constant 4.000000e+00 : f32
    %19 = vector.broadcast %cst_11 : f32 to vector<128x128xf32>
    %20 = arith.mulf %18, %19 : vector<128x128xf32>
    %cst_12 = arith.constant 1.000000e+00 : f32
    %21 = vector.broadcast %cst_12 : f32 to vector<128x128xf32>
    %22 = arith.addf %20, %21 : vector<128x128xf32>
    %c0_13 = arith.constant 0 : index
    %c0_14 = arith.constant 0 : index
    %23 = vector.load %arg5[%c0_13, %c0_14] : memref<128x128xf32, #tpu.memory_space<vmem>>, vector<128x128xf32>
    tpu.vector_store %arg5[%c0_13, %c0_14], %22 {strides = array<i32>} : memref<128x128xf32, #tpu.memory_space<vmem>>, vector<128x128xf32>,
    return
  }
  func.func @transform_0(%arg0: i32) -> (i32, i32) {
    %c0_i32 = arith.constant 0 : i32
    %c0_i32_0 = arith.constant 0 : i32
    return %arg0, %c0_i32 : i32, i32
  }
  func.func @transform_1(%arg0: i32) -> (i32, i32) {
    %c0_i32 = arith.constant 0 : i32
    %c0_i32_0 = arith.constant 0 : i32
    %c0_i32_1 = arith.constant 0 : i32
    return %c0_i32, %c0_i32_0 : i32, i32
  }
  func.func @transform_2(%arg0: i32) -> (i32, i32) {
    %c0_i32 = arith.constant 0 : i32
    %c0_i32_0 = arith.constant 0 : i32
    %c0_i32_1 = arith.constant 0 : i32
    return %c0_i32, %c0_i32_0 : i32, i32
  }
  func.func @transform_3(%arg0: i32) -> (i32, i32) {
    %c0_i32 = arith.constant 0 : i32
    %c0_i32_0 = arith.constant 0 : i32
    %c0_i32_1 = arith.constant 0 : i32
    return %c0_i32, %c0_i32_0 : i32, i32
  }
  func.func @transform_4(%arg0: i32) -> (i32, i32) {
    %c0_i32 = arith.constant 0 : i32
    %c0_i32_0 = arith.constant 0 : i32
    return %arg0, %c0_i32 : i32, i32
  }
}

</mosaic_0001>

<bundles_post_ra>
// kernel: simple_nn_forward.1
= control target key start
LH: loop header
LB: loop body
LE: loop exit
PB: predicated region body
PF: predicated region fallthrough
CT: control target
= control target key end

     0   :  { %s1004_s15 = smov 0   ;;  %s1092_s0 = inlined_call_operand.vmem [shape: bf16[256,16], index: 0, kind: input, shape index: {}]   ;;  %s1093_s1 = inlined_call_operand.vmem [shape: bf16[16,32], index: 1, kind: input, shape index: {}]   ;;  %s1094_s2 = inlined_call_operand.vmem [shape: bf16[32,128], index: 2, kind: input, shape index: {}]   ;;  %s1095_s3 = inlined_call_operand.vmem [shape: f32[1,160], index: 3, kind: input, shape index: {}]   ;;  %s1096_s4 = inlined_call_operand.vmem [shape: f32[256,128], index: 4, kind: output, shape index: {}]  }
   0x1 LB: > { %s774_s16 = sadd.s32 4294967295, %s976_s15   ;;  %p778_p0 = scmp.ge.s32.totalorder %s976_s15, 1  ;;  %s976_s15 = sphi %s1004_s15, %s14_s15  }
   0x2   : > { %p163_p1 = scmp.lt.s32.totalorder %s976_s15, 3 }
   0x4   : > { %p164_p2 = pnand %p778_p0, %p163_p1 }
   0x5   : > { %v895_v0 = vld [vmem:[%s1093_s1] sm:$0xff] (!%p164_p2)   ;;  %s779_s19 = sshll.u32 (!%p164_p2), %s774_s16, 4  ;;  %vm274_vm0 = vcmask (!%p164_p2), 130048   ;;  %v905_v10 = vld [vmem:[%s1094_s2 + $0x8] sm:$0xff] (!%p164_p2)   ;;  %v425_v11 = vlaneseq (!%p164_p2)  ;;  %s978_s30 = smov (!%p164_p2), 96   ;;  %vm452_vm1 = vcmask (!%p164_p2), 261120  }
   0x6   : > { %167 = sbr.rel (%p164_p2) target bundleno = 513 (0x201), region = 36  ;;  %p190_p3 = scmp.lt.s32.totalorder (!%p164_p2), %s779_s19, 31  ;;  %848 = vmatprep.subr.bf16.mxu0 (!%p164_p2), %v895_v0  ;;  %v904_v9 = vld [vmem:[%s1094_s2] sm:$0xff] (!%p164_p2)   ;;  %vm449_vm2 = vcmask (!%p164_p2), 785408  }
   0x7   : > { %849 = vmatpush3.bf16.msra.mxu0 (!%p164_p2), %v895_v0  ;;  %866 = vmatprep.subr.bf16.mxu1 (!%p164_p2), %v904_v9  ;;  %v426_v12 = vshrl.u32 (!%p164_p2), %v425_v11, 7  ;;  %v203_v13 = vld [vmem:[%s1095_s3] sm:$0x3] (!%p164_p2) }
   0x8   : > { %867 = vmatpush3.bf16.msra.mxu1 (!%p164_p2), %v904_v9  ;;  %v783_v18 = vld [vmem:[%s1095_s3] ss:$0 sm:$0xff] (!%p164_p2) }
   0x9   : > { %868 = vmatprep.subr.bf16.mxu1 (!%p164_p2), %v905_v10  ;;  %v427_v14 = vsub.s32 (!%p164_p2), 0, %v426_v12  ;;  %v431_v15 = vsub.s32 (!%p164_p2), 1, %v426_v12 }
   0xb   : > { %v428_v16 = vrot.slane (!%p164_p2), %v203_v13, %v427_v14  ;;  %v432_v17 = vrot.slane (!%p164_p2), %v203_v13, %v431_v15 }
   0xc   : > { %869 = vmatpush3.bf16.msra.mxu1 (!%p164_p2), %v905_v10 }
   0xd   : > { %s1098_s19 = smov (!%p190_p3, %s779_s19), 31  ;;  %445 = vrot.lane.b32.xlu0 %v428_v16, %s978_s30 }
   0xe   : > { %s780_s20 = sshll.u32 %s1098_s19, 2  ;;  %s782_s7 = sshll.u32 %s1098_s19, 3 }
   0xf   : > { %s193_s23 = scalar_lea.vmem %s1092_s0, %s780_s20  ;;  %s1071_s10 = scalar_lea.vmem %s1096_s4, %s782_s7 }
  0x10   : > { %v896_v1 = vld [vmem:[%s193_s23] sm:$0xff]   ;;  %v897_v2 = vld [vmem:[%s193_s23 + $0x8] sm:$0xff]   ;;  %v898_v3 = vld [vmem:[%s193_s23 + $0x10] sm:$0xff]  }
  0x11   : > { %850 = vmatprep.mubr.msk.bf16.mxu0 %vm274_vm0, %v896_v1  ;;  %v899_v4 = vld [vmem:[%s193_s23 + $0x18] sm:$0xff]   ;;  %v900_v5 = vld [vmem:[%s193_s23 + $0x20] sm:$0xff]   ;;  %v901_v6 = vld [vmem:[%s193_s23 + $0x28] sm:$0xff]   ;;  %447 = vrot.lane.b32.xlu0 %v432_v17, %s978_s30 }
  0x12   : > { %851 = vmatmul.mubr.msk.bf16.vlgmr.msra.gmra.mrb[0].mxu0 %vm274_vm0, %v897_v2  ;;  %v902_v7 = vld [vmem:[%s193_s23 + $0x30] sm:$0xff]   ;;  %v903_v8 = vld [vmem:[%s193_s23 + $0x38] sm:$0xff]  }
  0x13   : > { %854 = vmatprep.mubr.msk.bf16.mxu0 %vm274_vm0, %v898_v3 }
  0x1a   : > { %855 = vmatmul.mubr.msk.bf16.gmra.mrb[4].mxu0 %vm274_vm0, %v899_v4 }
  0x1b   : > { %858 = vmatprep.mubr.msk.bf16.mxu0 %vm274_vm0, %v900_v5 }
  0x22   : > { %859 = vmatmul.mubr.msk.bf16.gmra.mrb[8].mxu0 %vm274_vm0, %v901_v6 }
  0x23   : > { %862 = vmatprep.mubr.msk.bf16.mxu0 %vm274_vm0, %v902_v7 }
  0x2a   : > { %863 = vmatmul.mubr.msk.bf16.gmra.mrb[12].mxu0 %vm274_vm0, %v903_v8 }
  0x7f   : > { %v446_v11 = vpop.permute.xlu0 %445 }
  0x83   : > { %v448_v12 = vpop.permute.xlu0 %447 }
  0x84   : > { %v1049_v13 = vsel %vm449_vm2, %v446_v11, %v448_v12 }
  0xe5   : > { %v852_v19 = vpop.f32.mrb[0].mxu0 }
  0xe6   : > { %v342_v20 = vadd.f32 %v852_v19, %v783_v18  ;;  %v333_v21 = vpop.f32.mrb[1].mxu0 }
  0xe7   : > { %v334_v22 = vadd.f32 %v783_v18, %v333_v21  ;;  %v853_v23 = vpop.f32.mrb[2].mxu0 }
  0xe8   : > { %v345_v24 = vadd.f32 %v853_v23, %v783_v18  ;;  %v336_v25 = vpop.f32.mrb[3].mxu0  ;;  %v398_v27 = vmax.f32 %v342_v20, 0.0 }
  0xe9   : > { %v337_v26 = vadd.f32 %v783_v18, %v336_v25  ;;  %v396_v29 = vmax.f32 %v334_v22, 0.0 }
  0xea   : > { %v399_v28 = vmax.f32 %v345_v24, 0.0 }
  0xeb   : > { %v397_v30 = vmax.f32 %v337_v26, 0.0 }
  0xec   : > { %v413_v31 = vpack.c.bf16 %v399_v28, %v398_v27 }
  0xed   : > { %v856_v32 = vpop.f32.mrb[4].mxu0  ;;  %v412_v33 = vpack.c.bf16 %v397_v30, %v396_v29 }
  0xee   : > { %v358_v34 = vadd.f32 %v856_v32, %v783_v18  ;;  %v349_v35 = vpop.f32.mrb[5].mxu0 }
  0xef   : > { %v350_v36 = vadd.f32 %v783_v18, %v349_v35  ;;  %v857_v37 = vpop.f32.mrb[6].mxu0  ;;  %870 = vmatprep.mubr.msk.bf16.mxu1 %vm452_vm1, %v412_v33 }
  0xf0   : > { %v361_v38 = vadd.f32 %v857_v37, %v783_v18  ;;  %v352_v39 = vpop.f32.mrb[7].mxu0  ;;  %871 = vmatmul.mubr.msk.bf16.vlgmr.msra.gmra.mrb[0].mxu1 %vm452_vm1, %v413_v31  ;;  %v402_v41 = vmax.f32 %v358_v34, 0.0 }
  0xf1   : > { %v353_v40 = vadd.f32 %v783_v18, %v352_v39  ;;  %v400_v43 = vmax.f32 %v350_v36, 0.0 }
  0xf2   : > { %v403_v42 = vmax.f32 %v361_v38, 0.0 }
  0xf3   : > { %v401_v44 = vmax.f32 %v353_v40, 0.0 }
  0xf4   : > { %v415_v45 = vpack.c.bf16 %v403_v42, %v402_v41 }
  0xf5   : > { %v414_v46 = vpack.c.bf16 %v401_v44, %v400_v43  ;;  %v860_v47 = vpop.f32.mrb[8].mxu0 }
  0xf6   : > { %v374_v48 = vadd.f32 %v860_v47, %v783_v18  ;;  %v365_v49 = vpop.f32.mrb[9].mxu0 }
  0xf7   : > { %v366_v50 = vadd.f32 %v783_v18, %v365_v49  ;;  %v861_v51 = vpop.f32.mrb[10].mxu0  ;;  %874 = vmatprep.mubr.msk.bf16.mxu1 %vm452_vm1, %v414_v46 }
  0xf8   : > { %v377_v52 = vadd.f32 %v861_v51, %v783_v18  ;;  %v368_v53 = vpop.f32.mrb[11].mxu0  ;;  %875 = vmatmul.mubr.msk.bf16.gmra.mrb[4].mxu1 %vm452_vm1, %v415_v45  ;;  %v406_v55 = vmax.f32 %v374_v48, 0.0 }
  0xf9   : > { %v369_v54 = vadd.f32 %v783_v18, %v368_v53  ;;  %v404_v57 = vmax.f32 %v366_v50, 0.0 }
  0xfa   : > { %v407_v56 = vmax.f32 %v377_v52, 0.0 }
  0xfb   : > { %v405_v58 = vmax.f32 %v369_v54, 0.0 }
  0xfc   : > { %v417_v59 = vpack.c.bf16 %v407_v56, %v406_v55 }
  0xfd   : > { %v416_v60 = vpack.c.bf16 %v405_v58, %v404_v57  ;;  %v864_v61 = vpop.f32.mrb[12].mxu0 }
  0xfe   : > { %v390_v62 = vadd.f32 %v864_v61, %v783_v18  ;;  %v381_v63 = vpop.f32.mrb[13].mxu0 }
  0xff   : > { %v382_v0 = vadd.f32 %v783_v18, %v381_v63  ;;  %v865_v1 = vpop.f32.mrb[14].mxu0  ;;  %878 = vmatprep.mubr.msk.bf16.mxu1 %vm452_vm1, %v416_v60 }
 0x100   : > { %v393_v2 = vadd.f32 %v865_v1, %v783_v18  ;;  %v384_v3 = vpop.f32.mrb[15].mxu0  ;;  %879 = vmatmul.mubr.msk.bf16.gmra.mrb[8].mxu1 %vm452_vm1, %v417_v59  ;;  %v410_v5 = vmax.f32 %v390_v62, 0.0 }
 0x101   : > { %v385_v4 = vadd.f32 %v783_v18, %v384_v3  ;;  %v408_v7 = vmax.f32 %v382_v0, 0.0 }
 0x102   : > { %v411_v6 = vmax.f32 %v393_v2, 0.0 }
 0x103   : > { %v409_v8 = vmax.f32 %v385_v4, 0.0 }
 0x104   : > { %v419_v9 = vpack.c.bf16 %v411_v6, %v410_v5 }
 0x105   : > { %v418_v10 = vpack.c.bf16 %v409_v8, %v408_v7 }
 0x107   : > { %882 = vmatprep.mubr.msk.bf16.mxu1 %vm452_vm1, %v418_v10 }
 0x108   : > { %883 = vmatmul.mubr.msk.bf16.gmra.mrb[12].mxu1 %vm452_vm1, %v419_v9 }
 0x1c3   : > { %v872_v14 = vpop.f32.mrb[0].mxu1 }
 0x1c4   : > { %v520_v15 = vadd.f32 %v872_v14, %v1049_v13  ;;  %v511_v16 = vpop.f32.mrb[1].mxu1 }
 0x1c5   : > { %v512_v17 = vadd.f32 %v511_v16, %v1049_v13  ;;  %v873_v18 = vpop.f32.mrb[2].mxu1 }
 0x1c6   : > { %v813_v19 = vmul.f32 -1.442695, %v520_v15  ;;  %v523_v20 = vadd.f32 %v873_v18, %v1049_v13  ;;  %v514_v21 = vpop.f32.mrb[3].mxu1 }
 0x1c7   : > { %v811_v22 = vmul.f32 -1.442695, %v512_v17  ;;  %v515_v23 = vadd.f32 %v514_v21, %v1049_v13 }
 0x1c8   : > { %906 = vpow2.f32 %v813_v19  ;;  %v814_v24 = vmul.f32 -1.442695, %v523_v20 }
 0x1c9   : > { %908 = vpow2.f32 %v811_v22  ;;  %v812_v25 = vmul.f32 -1.442695, %v515_v23 }
 0x1ca   : > { %910 = vpow2.f32 %v814_v24 }
 0x1cb   : > { %912 = vpow2.f32 %v812_v25  ;;  %v876_v26 = vpop.f32.mrb[4].mxu1 }
 0x1cc   : > { %v536_v27 = vadd.f32 %v876_v26, %v1049_v13  ;;  %v527_v28 = vpop.f32.mrb[5].mxu1 }
 0x1cd   : > { %v528_v29 = vadd.f32 %v527_v28, %v1049_v13  ;;  %v877_v30 = vpop.f32.mrb[6].mxu1 }
 0x1ce   : > { %v817_v31 = vmul.f32 -1.442695, %v536_v27  ;;  %v539_v32 = vadd.f32 %v877_v30, %v1049_v13  ;;  %v530_v33 = vpop.f32.mrb[7].mxu1 }
 0x1cf   : > { %v815_v34 = vmul.f32 -1.442695, %v528_v29  ;;  %v531_v35 = vadd.f32 %v530_v33, %v1049_v13 }
 0x1d0   : > { %914 = vpow2.f32 %v817_v31  ;;  %v818_v36 = vmul.f32 -1.442695, %v539_v32 }
 0x1d1   : > { %916 = vpow2.f32 %v815_v34  ;;  %v816_v37 = vmul.f32 -1.442695, %v531_v35 }
 0x1d2   : > { %v907_v38 = vpop.eup %906  ;;  %918 = vpow2.f32 %v818_v36 }
 0x1d3   : > { %v909_v39 = vpop.eup %908  ;;  %v624_v40 = vadd.f32 1.0, %v907_v38  ;;  %920 = vpow2.f32 %v816_v37  ;;  %v880_v41 = vpop.f32.mrb[8].mxu1 }
 0x1d4   : > { %v911_v42 = vpop.eup %910  ;;  %v622_v43 = vadd.f32 1.0, %v909_v39  ;;  %v552_v44 = vadd.f32 %v880_v41, %v1049_v13  ;;  %v543_v45 = vpop.f32.mrb[9].mxu1 }
 0x1d5   : > { %v913_v46 = vpop.eup %912  ;;  %922 = vrcp.f32 %v624_v40  ;;  %v625_v47 = vadd.f32 1.0, %v911_v42  ;;  %v544_v48 = vadd.f32 %v543_v45, %v1049_v13  ;;  %v881_v49 = vpop.f32.mrb[10].mxu1 }
 0x1d6   : > { %924 = vrcp.f32 %v622_v43  ;;  %v623_v50 = vadd.f32 1.0, %v913_v46  ;;  %v821_v51 = vmul.f32 -1.442695, %v552_v44  ;;  %v555_v52 = vadd.f32 %v881_v49, %v1049_v13  ;;  %v546_v53 = vpop.f32.mrb[11].mxu1 }
 0x1d7   : > { %926 = vrcp.f32 %v625_v47  ;;  %v819_v54 = vmul.f32 -1.442695, %v544_v48  ;;  %v547_v55 = vadd.f32 %v546_v53, %v1049_v13 }
 0x1d8   : > { %928 = vrcp.f32 %v623_v50  ;;  %v822_v56 = vmul.f32 -1.442695, %v555_v52 }
 0x1d9   : > { %930 = vpow2.f32 %v821_v51  ;;  %v820_v57 = vmul.f32 -1.442695, %v547_v55 }
 0x1da   : > { %v915_v58 = vpop.eup %914  ;;  %932 = vpow2.f32 %v819_v54 }
 0x1db   : > { %v917_v59 = vpop.eup %916  ;;  %v628_v60 = vadd.f32 1.0, %v915_v58  ;;  %934 = vpow2.f32 %v822_v56  ;;  %v884_v61 = vpop.f32.mrb[12].mxu1 }
 0x1dc   : > { %v919_v62 = vpop.eup %918  ;;  %v626_v63 = vadd.f32 1.0, %v917_v59  ;;  %936 = vpow2.f32 %v820_v57  ;;  %v568_v0 = vadd.f32 %v884_v61, %v1049_v13  ;;  %v559_v1 = vpop.f32.mrb[13].mxu1 }
 0x1dd   : > { %v921_v2 = vpop.eup %920  ;;  %938 = vrcp.f32 %v628_v60  ;;  %v629_v3 = vadd.f32 1.0, %v919_v62  ;;  %v560_v4 = vadd.f32 %v559_v1, %v1049_v13  ;;  %v885_v5 = vpop.f32.mrb[14].mxu1 }
 0x1de   : > { %940 = vrcp.f32 %v626_v63  ;;  %v627_v6 = vadd.f32 1.0, %v921_v2  ;;  %v825_v7 = vmul.f32 -1.442695, %v568_v0  ;;  %v571_v8 = vadd.f32 %v885_v5, %v1049_v13  ;;  %v562_v9 = vpop.f32.mrb[15].mxu1 }
 0x1df   : > { %v923_v10 = vpop.eup %922  ;;  %942 = vrcp.f32 %v629_v3  ;;  %v823_v11 = vmul.f32 -1.442695, %v560_v4  ;;  %v563_v12 = vadd.f32 %v562_v9, %v1049_v13 }
 0x1e0   : > { %v925_v14 = vpop.eup %924  ;;  %v672_v15 = vmul.f32 4.0, %v923_v10  ;;  %944 = vrcp.f32 %v627_v6  ;;  %v826_v16 = vmul.f32 -1.442695, %v571_v8 }
 0x1e1   : > { %v927_v17 = vpop.eup %926  ;;  %v670_v18 = vmul.f32 4.0, %v925_v14  ;;  %946 = vpow2.f32 %v825_v7  ;;  %v824_v19 = vmul.f32 -1.442695, %v563_v12 }
 0x1e2   : > { %v929_v20 = vpop.eup %928  ;;  %v688_v21 = vadd.f32 1.0, %v672_v15  ;;  %v673_v22 = vmul.f32 4.0, %v927_v17  ;;  %948 = vpow2.f32 %v823_v11 }
 0x1e3   : > { %v931_v13 = vpop.eup %930  ;;  %v686_v23 = vadd.f32 1.0, %v670_v18  ;;  %v671_v24 = vmul.f32 4.0, %v929_v20  ;;  %950 = vpow2.f32 %v826_v16 }
 0x1e4   : > { %v933_v25 = vpop.eup %932  ;;  %704 = vst [vmem:[%s1071_s10 + $0x10] sm:$0xff] %v688_v21  ;;  %v689_v26 = vadd.f32 1.0, %v673_v22  ;;  %v632_v27 = vadd.f32 1.0, %v931_v13  ;;  %952 = vpow2.f32 %v824_v19 }
 0x1e5   : > { %v935_v28 = vpop.eup %934  ;;  %702 = vst [vmem:[%s1071_s10] sm:$0xff] %v686_v23  ;;  %v687_v29 = vadd.f32 1.0, %v671_v24  ;;  %v630_v30 = vadd.f32 1.0, %v933_v25 }
 0x1e6   : > { %v937_v31 = vpop.eup %936  ;;  %705 = vst [vmem:[%s1071_s10 + $0x18] sm:$0xff] %v689_v26  ;;  %954 = vrcp.f32 %v632_v27  ;;  %v633_v32 = vadd.f32 1.0, %v935_v28 }
 0x1e7   : > { %v939_v33 = vpop.eup %938  ;;  %703 = vst [vmem:[%s1071_s10 + $0x8] sm:$0xff] %v687_v29  ;;  %956 = vrcp.f32 %v630_v30  ;;  %v631_v34 = vadd.f32 1.0, %v937_v31 }
 0x1e8   : > { %v941_v35 = vpop.eup %940  ;;  %v676_v36 = vmul.f32 4.0, %v939_v33  ;;  %958 = vrcp.f32 %v633_v32 }
 0x1e9   : > { %v943_v37 = vpop.eup %942  ;;  %v674_v38 = vmul.f32 4.0, %v941_v35  ;;  %960 = vrcp.f32 %v631_v34 }
 0x1ea   : > { %v945_v39 = vpop.eup %944  ;;  %v692_v40 = vadd.f32 1.0, %v676_v36  ;;  %v677_v41 = vmul.f32 4.0, %v943_v37 }
 0x1eb   : > { %v947_v42 = vpop.eup %946  ;;  %v690_v43 = vadd.f32 1.0, %v674_v38  ;;  %v675_v44 = vmul.f32 4.0, %v945_v39 }
 0x1ec   : > { %v949_v45 = vpop.eup %948  ;;  %708 = vst [vmem:[%s1071_s10 + $0x30] sm:$0xff] %v692_v40  ;;  %v693_v46 = vadd.f32 1.0, %v677_v41  ;;  %v636_v47 = vadd.f32 1.0, %v947_v42 }
 0x1ed   : > { %v951_v48 = vpop.eup %950  ;;  %706 = vst [vmem:[%s1071_s10 + $0x20] sm:$0xff] %v690_v43  ;;  %v691_v49 = vadd.f32 1.0, %v675_v44  ;;  %v634_v50 = vadd.f32 1.0, %v949_v45 }
 0x1ee   : > { %v953_v51 = vpop.eup %952  ;;  %709 = vst [vmem:[%s1071_s10 + $0x38] sm:$0xff] %v693_v46  ;;  %962 = vrcp.f32 %v636_v47  ;;  %v637_v52 = vadd.f32 1.0, %v951_v48 }
 0x1ef   : > { %707 = vst [vmem:[%s1071_s10 + $0x28] sm:$0xff] %v691_v49  ;;  %964 = vrcp.f32 %v634_v50  ;;  %v635_v53 = vadd.f32 1.0, %v953_v51 }
 0x1f0   : > { %v955_v54 = vpop.eup %954  ;;  %966 = vrcp.f32 %v637_v52 }
 0x1f1   : > { %v957_v55 = vpop.eup %956  ;;  %v680_v56 = vmul.f32 4.0, %v955_v54  ;;  %968 = vrcp.f32 %v635_v53 }
 0x1f2   : > { %v959_v57 = vpop.eup %958  ;;  %v678_v58 = vmul.f32 4.0, %v957_v55 }
 0x1f3   : > { %v961_v59 = vpop.eup %960  ;;  %v696_v60 = vadd.f32 1.0, %v680_v56  ;;  %v681_v61 = vmul.f32 4.0, %v959_v57 }
 0x1f4   : > { %v694_v62 = vadd.f32 1.0, %v678_v58  ;;  %v679_v63 = vmul.f32 4.0, %v961_v59 }
 0x1f5   : > { %712 = vst [vmem:[%s1071_s10 + $0x50] sm:$0xff] %v696_v60  ;;  %v697_v0 = vadd.f32 1.0, %v681_v61 }
 0x1f6   : > { %710 = vst [vmem:[%s1071_s10 + $0x40] sm:$0xff] %v694_v62  ;;  %v695_v1 = vadd.f32 1.0, %v679_v63 }
 0x1f7   : > { %713 = vst [vmem:[%s1071_s10 + $0x58] sm:$0xff] %v697_v0 }
 0x1f8   : > { %v963_v2 = vpop.eup %962  ;;  %711 = vst [vmem:[%s1071_s10 + $0x48] sm:$0xff] %v695_v1 }
 0x1f9   : > { %v965_v3 = vpop.eup %964  ;;  %v684_v4 = vmul.f32 4.0, %v963_v2 }
 0x1fa   : > { %v967_v5 = vpop.eup %966  ;;  %v682_v6 = vmul.f32 4.0, %v965_v3 }
 0x1fb   : > { %v969_v7 = vpop.eup %968  ;;  %v700_v8 = vadd.f32 1.0, %v684_v4  ;;  %v685_v9 = vmul.f32 4.0, %v967_v5 }
 0x1fc   : > { %v698_v10 = vadd.f32 1.0, %v682_v6  ;;  %v683_v11 = vmul.f32 4.0, %v969_v7 }
 0x1fd   : > { %716 = vst [vmem:[%s1071_s10 + $0x70] sm:$0xff] %v700_v8  ;;  %v701_v12 = vadd.f32 1.0, %v685_v9 }
 0x1fe   : > { %714 = vst [vmem:[%s1071_s10 + $0x60] sm:$0xff] %v698_v10  ;;  %v699_v14 = vadd.f32 1.0, %v683_v11 }
 0x1ff   : > { %717 = vst [vmem:[%s1071_s10 + $0x78] sm:$0xff] %v701_v12 }
 0x200   : > { %715 = vst [vmem:[%s1071_s10 + $0x68] sm:$0xff] %v699_v14 }
 0x201 PF: > { %s14_s15 = sadd.s32 1, %s976_s15  }
 0x202   : > { %p11_p4 = scmp.ge.s32.totalorder %s14_s15, 4  }
 0x204   :  { %13 = sbr.rel (!%p11_p4) target bundleno = 1 (0x1), region = 66 }

</bundles_post_ra>
